<compile_context>
chip_gen: v5e
topology: v5e:2x2
jax: 0.10.0
libtpu: 0.0.40
codegen_flags: <defaults>
</compile_context>

<pallas_src>
import functools

import jax
import jax.numpy as jnp
from jax import lax
from jax.experimental import pallas as pl
from jax.experimental.pallas import tpu as pltpu


# ----------------------------- Pallas kernels --------------------------------

def _visual_kernel(img_ref, conv_w_ref, conv_b_ref, fc_w_ref, fc_b_ref,
                   drop_ref, o_ref, *, H, W, cin3):
    # img_ref: (H+2, W, 3*Cin)   -- one batch element, dx shifts pre-concatenated
    # conv_w_ref: (3, 3*Cin, Cc) bf16 ; conv_b_ref: (1, Cc) f32
    Cc = conv_w_ref.shape[2]
    feat = jnp.zeros((H * W, Cc), jnp.float32)
    # 3x3 conv == 3 vertical shifts x one (H*W, 3*Cin) @ (3*Cin, Cc) matmul each.
    for dy in range(3):
        patch = img_ref[dy:dy + H, :, :]                       # (H, W, 3*Cin)
        patch = patch.reshape(H * W, cin3).astype(jnp.bfloat16)
        feat = feat + jnp.dot(patch, conv_w_ref[dy],
                              preferred_element_type=jnp.float32)
    feat = jnp.maximum(feat + conv_b_ref[...], 0.0)            # bias + ReLU
    # global average pool over the H*W spatial positions (single sublane reduce)
    pooled = jnp.mean(feat, axis=0, keepdims=True)             # (1, Cc)
    # resnet.fc replacement -> d_model, dropout (keep/scale mask) fused in.
    vis = jnp.dot(pooled.astype(jnp.bfloat16), fc_w_ref[...],
                  preferred_element_type=jnp.float32) + fc_b_ref[...]
    o_ref[...] = vis * drop_ref[...]                           # (1, D)


def _rms(x, w):
    # T5 LayerNorm (RMSNorm: no mean subtraction, no bias), kept in f32.
    var = jnp.mean(x * x, axis=-1, keepdims=True)
    return x * lax.rsqrt(var + 1e-6) * w


def _decoder_kernel(dec_ids_ref, labels_ref, enc_ref, emb_ref, emb_t_ref,
                    ln1_ref, wqkv_ref, wo_ref, cv_ref, co_ref,
                    ln3_ref, wi_ref, wo_ffn_ref, lnf_ref,
                    logits_ref, per_tok_ref, *, T, n_heads, d_model, vocab):
    dh = d_model // n_heads

    # ---- embedding lookup via one-hot MXU matmul (bf16 x bf16 -> f32) ----
    # TODO(synk): at real vocab replace with a gather (scalar-prefetch row DMA).
    ids = dec_ids_ref[...]                                     # (T, 1) int32
    col = lax.broadcasted_iota(jnp.int32, (T, vocab), 1)
    onehot = (col == ids).astype(jnp.float32).astype(jnp.bfloat16)
    x = jnp.dot(onehot, emb_ref[...], preferred_element_type=jnp.float32)  # (T, D)

    # ---- causal multi-head self-attention (T5: no 1/sqrt(dh) scaling) ----
    # TODO(synk): T5 relative position bias omitted (pretrained table not
    # reproducible in-script).
    h = _rms(x, ln1_ref[...])
    qkv = jnp.dot(h.astype(jnp.bfloat16), wqkv_ref[...],
                  preferred_element_type=jnp.float32)          # (T, 3D)

    rr = lax.broadcasted_iota(jnp.int32, (T, T), 0)
    cc = lax.broadcasted_iota(jnp.int32, (T, T), 1)
    causal = jnp.where(rr >= cc, 0.0, -1e30).astype(jnp.float32)

    wo = wo_ref[...]
    attn = jnp.zeros((T, d_model), jnp.float32)
    for hd in range(n_heads):                  # 2 heads, dh=128 => 128-aligned slices
        q = qkv[:, hd * dh:(hd + 1) * dh].astype(jnp.bfloat16)
        k = qkv[:, d_model + hd * dh: d_model + (hd + 1) * dh].astype(jnp.bfloat16)
        v = qkv[:, 2 * d_model + hd * dh: 2 * d_model + (hd + 1) * dh].astype(jnp.bfloat16)
        s = lax.dot_general(q, k, (((1,), (1,)), ((), ())),    # q @ k.T, K=128
                            preferred_element_type=jnp.float32) + causal
        m = jnp.max(s, axis=-1, keepdims=True)
        p = jnp.exp(s - m)
        p = p * pl.reciprocal(jnp.sum(p, axis=-1, keepdims=True), approx=True)
        o = jnp.dot(p.astype(jnp.bfloat16), v,
                    preferred_element_type=jnp.float32)        # (T, dh)
        # merge-heads fused into the output projection: concat_h(o_h)@Wo
        attn = attn + jnp.dot(o.astype(jnp.bfloat16), wo[hd * dh:(hd + 1) * dh, :],
                              preferred_element_type=jnp.float32)
    x = x + attn

    # ---- cross-attention over the single visual token ----
    # Encoder sequence length is 1 -> softmax over keys is identically 1, so the
    # merged multi-head output is exactly enc @ Wv @ Wo for every query position
    # (ln2 / cq / ck are mathematically inert and not computed).
    v_enc = jnp.dot(enc_ref[...].astype(jnp.bfloat16), cv_ref[...],
                    preferred_element_type=jnp.float32)        # (1, D)
    cross = jnp.dot(v_enc.astype(jnp.bfloat16), co_ref[...],
                    preferred_element_type=jnp.float32)        # (1, D)
    x = x + cross                                              # broadcast over T

    # ---- feed forward (ReLU, T5-style) ----
    h = _rms(x, ln3_ref[...])
    h = jnp.maximum(jnp.dot(h.astype(jnp.bfloat16), wi_ref[...],
                            preferred_element_type=jnp.float32), 0.0)
    x = x + jnp.dot(h.astype(jnp.bfloat16), wo_ffn_ref[...],
                    preferred_element_type=jnp.float32)

    # ---- final norm + tied lm head (T5 scales hidden by d_model**-0.5) ----
    h = _rms(x, lnf_ref[...]) * (d_model ** -0.5)
    logits = jnp.dot(h.astype(jnp.bfloat16), emb_t_ref[...],   # pre-transposed (D, V)
                     preferred_element_type=jnp.float32)       # (T, V)
    logits_ref[...] = logits

    # ---- per-token cross entropy (ignore_index = -100), f32 ----
    labels = labels_ref[...]                                   # (T, 1)
    m = jnp.max(logits, axis=-1, keepdims=True)
    lse = m + jnp.log(jnp.sum(jnp.exp(logits - m), axis=-1, keepdims=True))
    lcol = lax.broadcasted_iota(jnp.int32, (T, vocab), 1)
    correct = jnp.sum(jnp.where(lcol == labels, logits, 0.0), axis=-1, keepdims=True)
    valid = (labels != -100).astype(jnp.float32)
    per_tok_ref[...] = (lse - correct) * valid                 # (T, 1)


# --------------------------- kernel wrappers ----------------------------------

def visual_features(prep, images, drop_scale):
    # TODO(synk): full pretrained ResNet-101 backbone cannot be reproduced
    # in-script; a structurally faithful conv stem + GAP + fc(.., d_model)
    # stand-in is used.
    B, Cin, H, W = images.shape
    Hp = H + 2
    cin3 = 3 * Cin
    x = jnp.transpose(images, (0, 2, 3, 1))                       # NCHW -> NHWC
    xp = jnp.pad(x, ((0, 0), (1, 1), (1, 1), (0, 0)))             # (B, Hp, Wp, Cin)
    # only the horizontal (dx) shifts are materialised host-side (3x, not 9x);
    # vertical shifts are static slices inside the kernel.
    xw = jnp.concatenate([xp[:, :, dx:dx + W, :] for dx in range(3)], axis=-1)

    Cc = prep["conv_w"].shape[-1]
    D = prep["fc_w"].shape[-1]
    kernel = functools.partial(_visual_kernel, H=H, W=W, cin3=cin3)

    flops = int(B * (2 * H * W * 3 * cin3 * Cc + 2 * Cc * D))
    bytes_accessed = int(xw.size * 4 + 2 * (prep["conv_w"].size + prep["fc_w"].size)
                         + 4 * (2 * B * D + Cc + D))

    return pl.pallas_call(
        kernel,
        out_shape=jax.ShapeDtypeStruct((B, 1, D), jnp.float32),   # includes unsqueeze(1)
        grid=(B,),
        in_specs=[pl.BlockSpec((None, Hp, W, cin3), lambda b: (b, 0, 0, 0)),
                  pl.BlockSpec((3, cin3, Cc), lambda b: (0, 0, 0)),
                  pl.BlockSpec((1, Cc), lambda b: (0, 0)),
                  pl.BlockSpec((Cc, D), lambda b: (0, 0)),
                  pl.BlockSpec((1, D), lambda b: (0, 0)),
                  pl.BlockSpec((None, 1, D), lambda b: (b, 0, 0))],
        out_specs=pl.BlockSpec((None, 1, D), lambda b: (b, 0, 0)),
        compiler_params=pltpu.CompilerParams(
            dimension_semantics=("parallel",),
            vmem_limit_bytes=32 * 1024 * 1024),
        cost_estimate=pl.CostEstimate(flops=flops, transcendentals=0,
                                      bytes_accessed=bytes_accessed),
    )(xw, prep["conv_w"], prep["conv_b"], prep["fc_w"], prep["fc_b"], drop_scale)


def t5_decoder_with_labels(prep, enc, labels, *, d_model, n_heads, vocab):
    B, T = labels.shape
    d_ff = prep["ffn_wi"].shape[-1]
    dh = d_model // n_heads

    # T5 shift-right (decoder_start_token_id = 0); -100 labels map to pad (0)
    dec_ids = jnp.concatenate([jnp.zeros((B, 1), labels.dtype), labels[:, :-1]], axis=1)
    dec_ids = jnp.where(dec_ids == -100, 0, dec_ids).astype(jnp.int32).reshape(B, T, 1)
    labels3 = labels.astype(jnp.int32).reshape(B, T, 1)

    kernel = functools.partial(_decoder_kernel, T=T, n_heads=n_heads,
                               d_model=d_model, vocab=vocab)

    flops = int(B * (2 * T * vocab * d_model + 2 * T * d_model * 3 * d_model
                     + n_heads * 4 * T * T * dh + 2 * T * d_model * d_model
                     + 4 * d_model * d_model + 4 * T * d_model * d_ff
                     + 2 * T * d_model * vocab))
    transcendentals = int(B * T * (vocab + n_heads * T))
    bytes_accessed = int(2 * (2 * vocab * d_model + 3 * d_model * d_model
                              + 3 * d_model * d_model + 2 * d_model * d_ff)
                         + 4 * B * T * vocab + 4 * B * (2 * T + d_model))

    logits, per_tok = pl.pallas_call(
        kernel,
        out_shape=(jax.ShapeDtypeStruct((B, T, vocab), jnp.float32),
                   jax.ShapeDtypeStruct((B, T, 1), jnp.float32)),
        grid=(B,),
        in_specs=[pl.BlockSpec((None, T, 1), lambda b: (b, 0, 0)),       # dec_ids
                  pl.BlockSpec((None, T, 1), lambda b: (b, 0, 0)),       # labels
                  pl.BlockSpec((None, 1, d_model), lambda b: (b, 0, 0)), # enc (visual)
                  pl.BlockSpec((vocab, d_model), lambda b: (0, 0)),      # emb (bf16)
                  pl.BlockSpec((d_model, vocab), lambda b: (0, 0)),      # emb.T (bf16)
                  pl.BlockSpec((1, d_model), lambda b: (0, 0)),          # ln1
                  pl.BlockSpec((d_model, 3 * d_model), lambda b: (0, 0)),# wqkv
                  pl.BlockSpec((d_model, d_model), lambda b: (0, 0)),    # wo
                  pl.BlockSpec((d_model, d_model), lambda b: (0, 0)),    # cv
                  pl.BlockSpec((d_model, d_model), lambda b: (0, 0)),    # co
                  pl.BlockSpec((1, d_model), lambda b: (0, 0)),          # ln3
                  pl.BlockSpec((d_model, d_ff), lambda b: (0, 0)),       # ffn wi
                  pl.BlockSpec((d_ff, d_model), lambda b: (0, 0)),       # ffn wo
                  pl.BlockSpec((1, d_model), lambda b: (0, 0))],         # ln_f
        out_specs=(pl.BlockSpec((None, T, vocab), lambda b: (b, 0, 0)),
                   pl.BlockSpec((None, T, 1), lambda b: (b, 0, 0))),
        compiler_params=pltpu.CompilerParams(
            dimension_semantics=("parallel",),
            vmem_limit_bytes=32 * 1024 * 1024),
        cost_estimate=pl.CostEstimate(flops=flops, transcendentals=transcendentals,
                                      bytes_accessed=bytes_accessed),
    )(dec_ids, labels3, enc, prep["emb_bf16"], prep["emb_t"],
      prep["ln1"], prep["wqkv"], prep["wo"], prep["cv"], prep["co"],
      prep["ln3"], prep["ffn_wi"], prep["ffn_wo"], prep["ln_f"])

    # final masked mean (tiny cross-batch reduction; partial sums come per batch)
    # NOTE: when every label is -100 this returns 0 (clamped count), whereas
    # PyTorch's mean over zero valid tokens would be NaN.
    valid = (labels != -100)
    count = jnp.maximum(jnp.sum(valid), 1).astype(jnp.float32)
    loss = jnp.sum(per_tok) / count
    return loss, logits


# --------------------------- model wiring (glue) ------------------------------

def init_params(key, *, cin=3, conv_c=128, d_model=256, d_ff=512, vocab=256):
    ks = jax.random.split(key, 16)
    s = 0.02
    p = {}
    p["conv_w"] = jax.random.normal(ks[0], (3, 3, cin, conv_c), jnp.float32) * s
    p["conv_b"] = jnp.zeros((conv_c,), jnp.float32)
    p["fc_w"] = jax.random.normal(ks[1], (conv_c, d_model), jnp.float32) * s
    p["fc_b"] = jnp.zeros((d_model,), jnp.float32)
    p["emb"] = jax.random.normal(ks[2], (vocab, d_model), jnp.float32) * s
    for name, i in [("wq", 3), ("wk", 4), ("wv", 5), ("wo", 6),
                    ("cq", 7), ("ck", 8), ("cv", 9), ("co", 10)]:
        # cq / ck (and ln2) kept for parameter-structure parity; mathematically
        # inert for a length-1 encoder sequence.
        p[name] = jax.random.normal(ks[i], (d_model, d_model), jnp.float32) * s
    p["ffn_wi"] = jax.random.normal(ks[11], (d_model, d_ff), jnp.float32) * s
    p["ffn_wo"] = jax.random.normal(ks[12], (d_ff, d_model), jnp.float32) * s
    for n in ("ln1", "ln2", "ln3", "ln_f"):
        p[n] = jnp.ones((1, d_model), jnp.float32)
    return p


def prepare_params(p):
    """One-off weight re-layout / precision prep (NOT per forward call):
    wqkv concat, tied-embedding transpose, conv weight flatten, bf16 MXU casts."""
    _, _, cin, conv_c = p["conv_w"].shape
    return dict(
        conv_w=p["conv_w"].reshape(3, 3 * cin, conv_c).astype(jnp.bfloat16),
        conv_b=p["conv_b"].reshape(1, conv_c),
        fc_w=p["fc_w"].astype(jnp.bfloat16),
        fc_b=p["fc_b"].reshape(1, -1),
        emb_bf16=p["emb"].astype(jnp.bfloat16),
        emb_t=p["emb"].T.astype(jnp.bfloat16),          # tied lm head, pre-transposed
        wqkv=jnp.concatenate([p["wq"], p["wk"], p["wv"]], axis=1).astype(jnp.bfloat16),
        wo=p["wo"].astype(jnp.bfloat16),
        cv=p["cv"].astype(jnp.bfloat16),
        co=p["co"].astype(jnp.bfloat16),
        ffn_wi=p["ffn_wi"].astype(jnp.bfloat16),
        ffn_wo=p["ffn_wo"].astype(jnp.bfloat16),
        ln1=p["ln1"], ln3=p["ln3"], ln_f=p["ln_f"],
    )


def r2gen_forward(prep, input_ids, attention_mask, images, labels=None, *,
                  cfg, dropout_key=None, training=True):
    # input_ids / attention_mask feed the T5 encoder, which is bypassed because
    # encoder_outputs=(visual_features,) is supplied — matching the reference module.
    del input_ids, attention_mask
    B = images.shape[0]
    d_model = cfg["d_model"]

    # nn.Dropout: identity in eval; in training an inverted-dropout keep/scale
    # mask applied inside the fused visual-extractor kernel.
    # TODO(synk): could be generated in-kernel with pltpu.prng_seed/prng_random_bits.
    if training and cfg["dropout"] > 0.0:
        if dropout_key is None:
            dropout_key = jax.random.PRNGKey(0)
        keep = jax.random.bernoulli(dropout_key, 1.0 - cfg["dropout"], (B, 1, d_model))
        drop_scale = keep.astype(jnp.float32) / (1.0 - cfg["dropout"])
    else:
        drop_scale = jnp.ones((B, 1, d_model), jnp.float32)

    vis = visual_features(prep, images, drop_scale)        # (B, 1, d_model)

    if labels is not None:
        return t5_decoder_with_labels(prep, vis, labels,
                                      d_model=d_model,
                                      n_heads=cfg["n_heads"],
                                      vocab=cfg["vocab"])
    # TODO(synk): autoregressive model.generate() path (no-labels branch) not implemented.
    raise NotImplementedError("generate() path not implemented")


# ------------------------------------ main ------------------------------------

if __name__ == "__main__":
    cfg = dict(d_model=256, n_heads=2, d_ff=512, vocab=256, dropout=0.1)
    B, T = 2, 8

    key = jax.random.PRNGKey(0)
    k_par, k_img, k_ids, k_lab, k_drop = jax.random.split(key, 5)

    params = init_params(k_par, cin=3, conv_c=128, d_model=cfg["d_model"],
                         d_ff=cfg["d_ff"], vocab=cfg["vocab"])
    prep = prepare_params(params)

    images = jax.random.normal(k_img, (B, 3, 16, 16), jnp.float32)   # NCHW like PyTorch
    input_ids = jax.random.randint(k_ids, (B, T), 0, cfg["vocab"], dtype=jnp.int32)
    attention_mask = jnp.ones((B, T), jnp.int32)
    labels = jax.random.randint(k_lab, (B, T), 0, cfg["vocab"], dtype=jnp.int32)

    loss, logits = r2gen_forward(prep, input_ids, attention_mask, images,
                                 labels=labels, cfg=cfg, dropout_key=k_drop,
                                 training=True)
    jax.block_until_ready((loss, logits))
    assert logits.shape == (B, T, cfg["vocab"])
    assert bool(jnp.isfinite(loss))
    print("KERNEL_OK")
</pallas_src>

<mosaic_0001>
module attributes {stable_mosaic.version = 11 : i64} {
  func.func @_visual_kernel(%arg0: i32, %arg1: memref<1x18x16x9xf32, #tpu.memory_space<vmem>>, %arg2: memref<3x9x128xbf16, #tpu.memory_space<vmem>>, %arg3: memref<1x128xf32, #tpu.memory_space<vmem>>, %arg4: memref<128x256xbf16, #tpu.memory_space<vmem>>, %arg5: memref<1x256xf32, #tpu.memory_space<vmem>>, %arg6: memref<1x1x256xf32, #tpu.memory_space<vmem>>, %arg7: memref<1x1x256xf32, #tpu.memory_space<vmem>>) attributes {dimension_semantics = [#tpu.dimension_semantics<parallel>], iteration_bounds = array<i64: 2>, scalar_prefetch = 0 : i64, scratch_operands = 0 : i64, tpu.core_type = #tpu.core_type<tc>, window_params = [{transform_indices = @transform_0, window_bounds = array<i64: 1, 18, 16, 9>}, {pipeline_mode = #tpu.pipeline_mode<synchronous>, transform_indices = @transform_1, window_bounds = array<i64: 3, 9, 128>}, {pipeline_mode = #tpu.pipeline_mode<synchronous>, transform_indices = @transform_2, window_bounds = array<i64: 1, 128>}, {pipeline_mode = #tpu.pipeline_mode<synchronous>, transform_indices = @transform_3, window_bounds = array<i64: 128, 256>}, {pipeline_mode = #tpu.pipeline_mode<synchronous>, transform_indices = @transform_4, window_bounds = array<i64: 1, 256>}, {transform_indices = @transform_5, window_bounds = array<i64: 1, 1, 256>}, {transform_indices = @transform_6, window_bounds = array<i64: 1, 1, 256>}]} {
    %cst = arith.constant 0.000000e+00 : f32
    %0 = vector.broadcast %cst : f32 to vector<256x128xf32>
    %c0 = arith.constant 0 : index
    %c0_0 = arith.constant 0 : index
    %c0_1 = arith.constant 0 : index
    %c0_2 = arith.constant 0 : index
    %1 = vector.load %arg1[%c0, %c0_0, %c0_1, %c0_2] : memref<1x18x16x9xf32, #tpu.memory_space<vmem>>, vector<1x16x16x9xf32>
    %2 = vector.shape_cast %1 : vector<1x16x16x9xf32> to vector<16x16x9xf32>
    %3 = vector.shape_cast %2 : vector<16x16x9xf32> to vector<256x9xf32>
    %4 = arith.truncf %3 : vector<256x9xf32> to vector<256x9xbf16>
    %c0_3 = arith.constant 0 : index
    %c0_4 = arith.constant 0 : index
    %c0_5 = arith.constant 0 : index
    %5 = vector.load %arg2[%c0_3, %c0_4, %c0_5] : memref<3x9x128xbf16, #tpu.memory_space<vmem>>, vector<1x9x128xbf16>
    %6 = vector.shape_cast %5 : vector<1x9x128xbf16> to vector<9x128xbf16>
    %cst_6 = arith.constant dense<0.000000e+00> : vector<256x128xf32>
    %7 = tpu.matmul %4, %6, %cst_6 {dimension_numbers = #tpu.dot_dimension_numbers<[1], [0], [0], [1], [0, 0, 1, 1], [], []>} : vector<256x9xbf16>, vector<9x128xbf16>, vector<256x128xf32> -> vector<256x128xf32>
    %8 = arith.addf %0, %7 : vector<256x128xf32>
    %c0_7 = arith.constant 0 : index
    %c1 = arith.constant 1 : index
    %c0_8 = arith.constant 0 : index
    %c0_9 = arith.constant 0 : index
    %9 = vector.load %arg1[%c0_7, %c1, %c0_8, %c0_9] : memref<1x18x16x9xf32, #tpu.memory_space<vmem>>, vector<1x16x16x9xf32>
    %10 = vector.shape_cast %9 : vector<1x16x16x9xf32> to vector<16x16x9xf32>
    %11 = vector.shape_cast %10 : vector<16x16x9xf32> to vector<256x9xf32>
    %12 = arith.truncf %11 : vector<256x9xf32> to vector<256x9xbf16>
    %c1_10 = arith.constant 1 : index
    %c0_11 = arith.constant 0 : index
    %c0_12 = arith.constant 0 : index
    %13 = vector.load %arg2[%c1_10, %c0_11, %c0_12] : memref<3x9x128xbf16, #tpu.memory_space<vmem>>, vector<1x9x128xbf16>
    %14 = vector.shape_cast %13 : vector<1x9x128xbf16> to vector<9x128xbf16>
    %cst_13 = arith.constant dense<0.000000e+00> : vector<256x128xf32>
    %15 = tpu.matmul %12, %14, %cst_13 {dimension_numbers = #tpu.dot_dimension_numbers<[1], [0], [0], [1], [0, 0, 1, 1], [], []>} : vector<256x9xbf16>, vector<9x128xbf16>, vector<256x128xf32> -> vector<256x128xf32>
    %16 = arith.addf %8, %15 : vector<256x128xf32>
    %c0_14 = arith.constant 0 : index
    %c2 = arith.constant 2 : index
    %c0_15 = arith.constant 0 : index
    %c0_16 = arith.constant 0 : index
    %17 = vector.load %arg1[%c0_14, %c2, %c0_15, %c0_16] : memref<1x18x16x9xf32, #tpu.memory_space<vmem>>, vector<1x16x16x9xf32>
    %18 = vector.shape_cast %17 : vector<1x16x16x9xf32> to vector<16x16x9xf32>
    %19 = vector.shape_cast %18 : vector<16x16x9xf32> to vector<256x9xf32>
    %20 = arith.truncf %19 : vector<256x9xf32> to vector<256x9xbf16>
    %c2_17 = arith.constant 2 : index
    %c0_18 = arith.constant 0 : index
    %c0_19 = arith.constant 0 : index
    %21 = vector.load %arg2[%c2_17, %c0_18, %c0_19] : memref<3x9x128xbf16, #tpu.memory_space<vmem>>, vector<1x9x128xbf16>
    %22 = vector.shape_cast %21 : vector<1x9x128xbf16> to vector<9x128xbf16>
    %cst_20 = arith.constant dense<0.000000e+00> : vector<256x128xf32>
    %23 = tpu.matmul %20, %22, %cst_20 {dimension_numbers = #tpu.dot_dimension_numbers<[1], [0], [0], [1], [0, 0, 1, 1], [], []>} : vector<256x9xbf16>, vector<9x128xbf16>, vector<256x128xf32> -> vector<256x128xf32>
    %24 = arith.addf %16, %23 : vector<256x128xf32>
    %c0_21 = arith.constant 0 : index
    %c0_22 = arith.constant 0 : index
    %25 = vector.load %arg3[%c0_21, %c0_22] : memref<1x128xf32, #tpu.memory_space<vmem>>, vector<1x128xf32>
    %26 = vector.broadcast %25 : vector<1x128xf32> to vector<256x128xf32>
    %27 = arith.addf %24, %26 : vector<256x128xf32>
    %cst_23 = arith.constant 0.000000e+00 : f32
    %28 = vector.broadcast %cst_23 : f32 to vector<256x128xf32>
    %29 = arith.maximumf %27, %28 : vector<256x128xf32>
    %cst_24 = arith.constant dense<0.000000e+00> : vector<128xf32>
    %30 = vector.multi_reduction <add>, %29, %cst_24 [0] : vector<256x128xf32> to vector<128xf32>
    %31 = vector.shape_cast %30 : vector<128xf32> to vector<1x128xf32>
    %cst_25 = arith.constant 2.560000e+02 : f32
    %32 = vector.broadcast %cst_25 : f32 to vector<1x128xf32>
    %33 = arith.divf %31, %32 : vector<1x128xf32>
    %34 = arith.truncf %33 : vector<1x128xf32> to vector<1x128xbf16>
    %c0_26 = arith.constant 0 : index
    %c0_27 = arith.constant 0 : index
    %35 = vector.load %arg4[%c0_26, %c0_27] : memref<128x256xbf16, #tpu.memory_space<vmem>>, vector<128x256xbf16>
    %cst_28 = arith.constant dense<0.000000e+00> : vector<1x256xf32>
    %36 = tpu.matmul %34, %35, %cst_28 {dimension_numbers = #tpu.dot_dimension_numbers<[1], [0], [0], [1], [0, 0, 1, 1], [], []>} : vector<1x128xbf16>, vector<128x256xbf16>, vector<1x256xf32> -> vector<1x256xf32>
    %c0_29 = arith.constant 0 : index
    %c0_30 = arith.constant 0 : index
    %37 = vector.load %arg5[%c0_29, %c0_30] : memref<1x256xf32, #tpu.memory_space<vmem>>, vector<1x256xf32>
    %38 = arith.addf %36, %37 : vector<1x256xf32>
    %c0_31 = arith.constant 0 : index
    %c0_32 = arith.constant 0 : index
    %c0_33 = arith.constant 0 : index
    %39 = vector.load %arg6[%c0_31, %c0_32, %c0_33] : memref<1x1x256xf32, #tpu.memory_space<vmem>>, vector<1x1x256xf32>
    %40 = vector.shape_cast %39 : vector<1x1x256xf32> to vector<1x256xf32>
    %41 = arith.mulf %38, %40 : vector<1x256xf32>
    %c0_34 = arith.constant 0 : index
    %c0_35 = arith.constant 0 : index
    %c0_36 = arith.constant 0 : index
    %42 = vector.load %arg7[%c0_34, %c0_35, %c0_36] : memref<1x1x256xf32, #tpu.memory_space<vmem>>, vector<1x1x256xf32>
    %43 = vector.shape_cast %42 : vector<1x1x256xf32> to vector<1x256xf32>
    %44 = vector.shape_cast %41 : vector<1x256xf32> to vector<1x1x256xf32>
    tpu.vector_store %arg7[%c0_34, %c0_35, %c0_36], %44 {strides = array<i32>} : memref<1x1x256xf32, #tpu.memory_space<vmem>>, vector<1x1x256xf32>,
    return
  }
  func.func @transform_0(%arg0: i32) -> (i32, i32, i32, i32) {
    %c0_i32 = arith.constant 0 : i32
    %c0_i32_0 = arith.constant 0 : i32
    %c0_i32_1 = arith.constant 0 : i32
    %c0_i32_2 = arith.constant 0 : i32
    return %arg0, %c0_i32, %c0_i32_0, %c0_i32_1 : i32, i32, i32, i32
  }
  func.func @transform_1(%arg0: i32) -> (i32, i32, i32) {
    %c0_i32 = arith.constant 0 : i32
    %c0_i32_0 = arith.constant 0 : i32
    %c0_i32_1 = arith.constant 0 : i32
    %c0_i32_2 = arith.constant 0 : i32
    return %c0_i32, %c0_i32_0, %c0_i32_1 : i32, i32, i32
  }
  func.func @transform_2(%arg0: i32) -> (i32, i32) {
    %c0_i32 = arith.constant 0 : i32
    %c0_i32_0 = arith.constant 0 : i32
    %c0_i32_1 = arith.constant 0 : i32
    return %c0_i32, %c0_i32_0 : i32, i32
  }
  func.func @transform_3(%arg0: i32) -> (i32, i32) {
    %c0_i32 = arith.constant 0 : i32
    %c0_i32_0 = arith.constant 0 : i32
    %c0_i32_1 = arith.constant 0 : i32
    return %c0_i32, %c0_i32_0 : i32, i32
  }
  func.func @transform_4(%arg0: i32) -> (i32, i32) {
    %c0_i32 = arith.constant 0 : i32
    %c0_i32_0 = arith.constant 0 : i32
    %c0_i32_1 = arith.constant 0 : i32
    return %c0_i32, %c0_i32_0 : i32, i32
  }
  func.func @transform_5(%arg0: i32) -> (i32, i32, i32) {
    %c0_i32 = arith.constant 0 : i32
    %c0_i32_0 = arith.constant 0 : i32
    %c0_i32_1 = arith.constant 0 : i32
    return %arg0, %c0_i32, %c0_i32_0 : i32, i32, i32
  }
  func.func @transform_6(%arg0: i32) -> (i32, i32, i32) {
    %c0_i32 = arith.constant 0 : i32
    %c0_i32_0 = arith.constant 0 : i32
    %c0_i32_1 = arith.constant 0 : i32
    return %arg0, %c0_i32, %c0_i32_0 : i32, i32, i32
  }
}

</mosaic_0001>

<bundles_post_ra>
// kernel: tpu_custom_call.1
= control target key start
LH: loop header
LB: loop body
LE: loop exit
PB: predicated region body
PF: predicated region fallthrough
CT: control target
= control target key end

     0   :  { %11 = vsyncpa [#allocation3], 0  ;;  %s2006_s0 = inlined_call_operand.vmem [shape: f32[2,18,16,9], index: 0, kind: input, shape index: {}]   ;;  %s2007_s1 = inlined_call_operand.vmem [shape: bf16[3,9,128], index: 1, kind: input, shape index: {}]   ;;  %s2008_s2 = inlined_call_operand.vmem [shape: f32[1,128], index: 2, kind: input, shape index: {}]   ;;  %s2009_s3 = inlined_call_operand.vmem [shape: bf16[128,256], index: 3, kind: input, shape index: {}]   ;;  %s2010_s4 = inlined_call_operand.vmem [shape: f32[1,256], index: 4, kind: input, shape index: {}]   ;;  %s2011_s5 = inlined_call_operand.vmem [shape: f32[2,1,256], index: 5, kind: input, shape index: {}]   ;;  %s2012_s6 = inlined_call_operand.hbm [shape: f32[2,1,256], index: 6, kind: output, shape index: {}]  }
   0x1   :  { %13 = vsyncpa [#allocation3 + $0x1], 0  ;;  %s1613_s21 = smov 0   ;;  %s1615_s22 = smov 0  }
   0x2   :  { %s1617_s23 = smov 0   ;;  %s1619_s24 = smov 0  }
   0x3 LB: > { %s1634_s25 = sadd.s32 4294967295, %s1574_s24   ;;  %s1242_s26 = sadd.s32 4294967294, %s1574_s24   ;;  %s1574_s24 = sphi %s1619_s24, %s2018_s24   ;;  %s1570_s23 = sphi %s1617_s23, %s2017_s23   ;;  %s1566_s22 = sphi %s1615_s22, %s2016_s22   ;;  %s1562_s21 = sphi %s1613_s21, %s2015_s21  }
   0x4   : > { %s1638_s27 = sadd.s32 1, %s1574_s24   ;;  %s162_s28 = sadd.s32 1, %s1570_s23 }
   0x5   : > { %s159_s29 = ssub.s32 %s1574_s24, %s1638_s27  ;;  %p172_p0 = scmp.ne.s32.totalorder %s1570_s23, %s1566_s22 }
   0x6   : > { %p160_p1 = scmp.eq.s32.totalorder %s159_s29, 0  ;;  %p173_p2 = scmp.eq.s32.totalorder %s1634_s25, 1 }
   0x7   : > { %p178_p3 = scmp.ne.s32.totalorder %s1566_s22, %s1562_s21  ;;  %p179_p4 = scmp.eq.s32.totalorder %s1242_s26, 1 }
   0x8   : > { %s1649_s30 = scalar_select %p160_p1, %s1570_s23, %s162_s28  }
   0x9   : > { %p1651_p5 = por %p173_p2, %p172_p0  ;;  %p1655_p6 = por %p179_p4, %p178_p3 }
   0xa   : > { %p1245_p7 = scmp.ge.s32.totalorder %s1574_s24, 1  ;;  %p224_p8 = scmp.lt.s32.totalorder %s1574_s24, 3 }
   0xc   : > { %p225_p9 = pnand %p1245_p7, %p224_p8 }
   0xd   : > { %p258_p10 = scmp.lt.s32.totalorder (!%p225_p9), %s1634_s25, 1  ;;  %s1442_s15 = sshll.u32 (!%p225_p9), %s1634_s25, 1 }
   0xe   : > { %228 = sbr.rel (%p225_p9) target bundleno = 557 (0x22d), region = 44  ;;  %s1532_s12 = scalar_lea.hbm (!%p225_p9), %s2012_s6, 4 }
  0x13   : > { %v1285_v0 = vld [vmem:[%s2007_s1 + $0x8] sm:$0xf]  ;;  %v1446_v1 = vld [vmem:[%s2007_s1 + $0x8] sm:$0x10]  ;;  %vm424_vm0 = vcmask 1043456   ;;  %vm425_vm1 = vcmask 1044480  }
  0x14   : > { %v1286_v2 = vor.u32 %v1446_v1, %v1285_v0  ;;  %v1305_v3 = vld [vmem:[%s2007_s1] sm:$0xf]  ;;  %v1445_v4 = vld [vmem:[%s2007_s1] sm:$0x10]  ;;  %v1576_v5 = vmov 65535   ;;  %s1681_s26 = scalar_select %p258_p10, %s1634_s25, 1 }
  0x15   : > { %v426_v6 = vsel %vm424_vm0, 4294967295, %v1576_v5  ;;  %v1306_v7 = vor.u32 %v1445_v4, %v1305_v3  ;;  %v1359_v8 = vld [vmem:[%s2007_s1 + $0x10] sm:$0xf]  ;;  %v1447_v9 = vld [vmem:[%s2007_s1 + $0x10] sm:$0x10]  ;;  %vm375_vm2 = vcmask 72704  }
  0x16   : > { %v427_v10 = vsel %vm425_vm1, %v426_v6, 0  ;;  %v1360_v11 = vor.u32 %v1447_v9, %v1359_v8  ;;  %s1467_s28 = smul.u32 288, %s1681_s26  ;;  %v1769_v8 = vld [vmem:[%s2008_s2] ss:$0 sm:$0xff]  ;;  %vm1147_vm4 = vcmask 1040384  }
  0x17   : > { %v429_v12 = vand.u32 %v1286_v2, %v427_v10  ;;  %v574_v13 = vand.u32 %v1306_v7, %v427_v10 }
  0x18   : > { %v771_v14 = vand.u32 %v1360_v11, %v427_v10  ;;  %s1687_s10 = scalar_lea.vmem %s2006_s0, %s1467_s28  ;;  %s1248_s28 = sshll.u32 %s1681_s26, 1 }
  0x19   : > { %438 = vmatpush.bf16.msra.mxu0 %v429_v12  ;;  %1464 = vmatpush.bf16.msra.mxu3 %v429_v12  ;;  %v1249_v15 = vld [vmem:[%s1687_s10 + $0x10] sm:$0xff]  ;;  %v1250_v16 = vld [vmem:[%s1687_s10 + $0x18] sm:$0xff]  ;;  %v1275_v17 = vld [vmem:[%s1687_s10 + $0xe0] sm:$0xff]  ;;  %s266_s13 = scalar_lea.vmem %s2011_s5, %s1248_s28  ;;  %s1166_s26 = scalar_lea.hbm %s2012_s6, %s1442_s15 }
  0x1a   : > { %583 = vmatpush.bf16.msra.mxu1 %v574_v13  ;;  %780 = vmatpush.bf16.msra.mxu2 %v771_v14  ;;  %v351_v18 = vpack.c.bf16 %v1250_v16, %v1249_v15  ;;  %v1276_v19 = vld [vmem:[%s1687_s10 + $0xe8] sm:$0xff]  ;;  %v268_v20 = vld [vmem:[%s1687_s10] sm:$0xff]  ;;  %v1277_v27 = vld [vmem:[%s1687_s10 + $0xf0] sm:$0xff]  ;;  %s1170_s20 = sshll.u32 %s1166_s26, 4  ;;  %s1171_s20 = int_to_ptr.hbm [resolvable:$true] %s1170_s20 }
  0x1b   : > { %v269_v21 = vld [vmem:[%s1687_s10 + $0x8] sm:$0xff]  ;;  %v1695_v22 = vpack.c.bf16 %v1276_v19, %v1275_v17  ;;  %v1323_v24 = vld [vmem:[%s1687_s10 + $0x20] sm:$0xff]  ;;  %v1278_v28 = vld [vmem:[%s1687_s10 + $0xf8] sm:$0xff]  ;;  %s1526_s28 = sshra.s32 %s1171_s20, 4  ;;  %s1527_s28 = int_to_ptr.hbm [resolvable:$true] %s1526_s28 }
  0x1c   : > { %v300_v23 = vpack.c.bf16 %v269_v21, %v268_v20  ;;  %v1324_v25 = vld [vmem:[%s1687_s10 + $0x28] sm:$0xff]  ;;  %1287 = vmatmul.msk.bf16.vlgmr.msra.gmra.mxu0 %vm375_vm2, %v351_v18  ;;  %v1325_v29 = vld [vmem:[%s1687_s10 + $0x30] sm:$0xff]  ;;  %v1326_v30 = vld [vmem:[%s1687_s10 + $0x38] sm:$0xff]  ;;  %v365_v31 = vpack.c.bf16 %v1278_v28, %v1277_v27  ;;  %s1528_s29 = scalar_lea.hbm %s1527_s28, 2  ;;  %p1533_p0 = scmp.lt.s32.totalorder %s1527_s28, %s2012_s6 }
  0x1d   : > { %1465 = vmatpush.bf16.msrb.mxu3 %v574_v13  ;;  %v698_v26 = vpack.c.bf16 %v1324_v25, %v1323_v24  ;;  %v699_v32 = vpack.c.bf16 %v1326_v30, %v1325_v29  ;;  %v1279_v33 = vld [vmem:[%s1687_s10 + $0x100] sm:$0xff]  ;;  %v1280_v34 = vld [vmem:[%s1687_s10 + $0x108] sm:$0xff]  ;;  %v294_v39 = vld [vmem:[%s1687_s10 + $0xd0] sm:$0xff]  ;;  %p1529_p11 = scmp.ne.s32.totalorder %s1527_s28, %s1528_s29  ;;  %p1534_p1 = scmp.lt.s32.totalorder %s1532_s12, %s1528_s29 }
  0x1e   : > { %1300 = vmatmul.msk.bf16.vlgmr.msra.gmra.mxu3 %vm375_vm2, %v1695_v22  ;;  %1307 = vmatmul.msk.bf16.vlgmr.msra.gmra.mxu1 %vm375_vm2, %v300_v23  ;;  %v1327_v35 = vld [vmem:[%s1687_s10 + $0x40] sm:$0xff]  ;;  %v1328_v36 = vld [vmem:[%s1687_s10 + $0x48] sm:$0xff]  ;;  %v366_v37 = vpack.c.bf16 %v1280_v34, %v1279_v33  ;;  %v295_v40 = vld [vmem:[%s1687_s10 + $0xd8] sm:$0xff] }
  0x1f   : > { %1361 = vmatmul.msk.bf16.vlgmr.msra.gmra.mxu2 %vm375_vm2, %v698_v26  ;;  %v700_v38 = vpack.c.bf16 %v1328_v36, %v1327_v35  ;;  %v1329_v41 = vld [vmem:[%s1687_s10 + $0x50] sm:$0xff]  ;;  %v1330_v42 = vld [vmem:[%s1687_s10 + $0x58] sm:$0xff]  ;;  %v1724_v43 = vpack.c.bf16 %v295_v40, %v294_v39  ;;  %v1331_v45 = vld [vmem:[%s1687_s10 + $0x60] sm:$0xff]  ;;  %p1530_p12 = pnand %p1529_p11, %p1651_p5  ;;  %p1535_p2 = por %p1534_p1, %p1533_p0 }
  0x20   : > { %v701_v44 = vpack.c.bf16 %v1330_v42, %v1329_v41  ;;  %v1332_v46 = vld [vmem:[%s1687_s10 + $0x68] sm:$0xff]  ;;  %v1333_v48 = vld [vmem:[%s1687_s10 + $0x70] sm:$0xff]  ;;  %v1334_v49 = vld [vmem:[%s1687_s10 + $0x78] sm:$0xff] }
  0x21   : > { %1466 = vmatpush.bf16.msra.mxu3 %v771_v14  ;;  %v702_v47 = vpack.c.bf16 %v1332_v46, %v1331_v45  ;;  %v703_v50 = vpack.c.bf16 %v1334_v49, %v1333_v48  ;;  %v1335_v51 = vld [vmem:[%s1687_s10 + $0x80] sm:$0xff]  ;;  %v1336_v52 = vld [vmem:[%s1687_s10 + $0x88] sm:$0xff]  ;;  %v1337_v54 = vld [vmem:[%s1687_s10 + $0x90] sm:$0xff]  ;;  %p1531_p13 = pneg %p1530_p12 }
  0x22   : > { %v704_v53 = vpack.c.bf16 %v1336_v52, %v1335_v51  ;;  %v1338_v55 = vld [vmem:[%s1687_s10 + $0x98] sm:$0xff]  ;;  %v1353_v57 = vld [vmem:[%s1687_s10 + $0x110] sm:$0xff]  ;;  %v1339_v59 = vld [vmem:[%s1687_s10 + $0xa0] sm:$0xff] }
  0x23   : > { %v705_v56 = vpack.c.bf16 %v1338_v55, %v1337_v54  ;;  %v1354_v58 = vld [vmem:[%s1687_s10 + $0x118] sm:$0xff]  ;;  %v1340_v60 = vld [vmem:[%s1687_s10 + $0xa8] sm:$0xff]  ;;  %v1341_v9 = vld [vmem:[%s1687_s10 + $0xb0] sm:$0xff]  ;;  %p1536_p3 = pnand %p1535_p2, %p1531_p13 }
  0x24   : > { %v713_v62 = vpack.c.bf16 %v1354_v58, %v1353_v57  ;;  %v706_v0 = vpack.c.bf16 %v1340_v60, %v1339_v59  ;;  %v1342_v10 = vld [vmem:[%s1687_s10 + $0xb8] sm:$0xff]  ;;  %v1344_v33 = vld [vmem:[%s1687_s10 + $0xc8] sm:$0xff] }
  0x25   : > { %v707_v17 = vpack.c.bf16 %v1342_v10, %v1341_v9 }
  0x2c   : > { %1288 = vmatmul.msk.bf16.gmra.mxu0 %vm375_vm2, %v698_v26 }
  0x2e   : > { %1301 = vmatmul.msk.bf16.gmra.mxu3 %vm375_vm2, %v365_v31  ;;  %1308 = vmatmul.msk.bf16.gmra.mxu1 %vm375_vm2, %v351_v18 }
  0x2f   : > { %1362 = vmatmul.msk.bf16.gmra.mxu2 %vm375_vm2, %v699_v32 }
  0x3c   : > { %1289 = vmatmul.msk.bf16.gmra.mxu0 %vm375_vm2, %v699_v32 }
  0x3e   : > { %1302 = vmatmul.msk.bf16.gmra.mxu3 %vm375_vm2, %v366_v37  ;;  %1309 = vmatmul.msk.bf16.gmra.mxu1 %vm375_vm2, %v698_v26 }
  0x3f   : > { %1363 = vmatmul.msk.bf16.gmra.mxu2 %vm375_vm2, %v700_v38 }
  0x4c   : > { %1290 = vmatmul.msk.bf16.gmra.mxu0 %vm375_vm2, %v700_v38 }
  0x4e   : > { %1310 = vmatmul.msk.bf16.gmra.mxu1 %vm375_vm2, %v699_v32  ;;  %1320 = vmatmul.msk.bf16.vlgmr.msrb.gmra.mxu3 %vm375_vm2, %v1724_v43  ;;  %v1343_v32 = vld [vmem:[%s1687_s10 + $0xc0] sm:$0xff]  ;;  %s255_s10 = sand.u32 1, %s1566_s22  }
  0x4f   : > { %1364 = vmatmul.msk.bf16.gmra.mxu2 %vm375_vm2, %v701_v44  ;;  %v708_v40 = vpack.c.bf16 %v1344_v33, %v1343_v32  ;;  %s1246_s14 = sshll.u32 %s255_s10, 1  ;;  %s1156_s25 = scalar_lea.sflag [#allocation3], %s255_s10 }
  0x50   : > { %s257_s18 = scalar_lea.vmem [#allocation2], %s1246_s14 }
  0x51   : > { %s1168_s19 = sshll.u32 %s257_s18, 4  ;;  %s1169_s19 = int_to_ptr.vmem [resolvable:$true] %s1168_s19 }
  0x5c   : > { %1291 = vmatmul.msk.bf16.gmra.mxu0 %vm375_vm2, %v701_v44 }
  0x5e   : > { %1311 = vmatmul.msk.bf16.gmra.mxu1 %vm375_vm2, %v700_v38  ;;  %1321 = vmatmul.msk.bf16.gmra.mxu3 %vm375_vm2, %v1695_v22 }
  0x5f   : > { %1365 = vmatmul.msk.bf16.gmra.mxu2 %vm375_vm2, %v702_v47 }
  0x6c   : > { %1292 = vmatmul.msk.bf16.gmra.mxu0 %vm375_vm2, %v702_v47 }
  0x6e   : > { %1312 = vmatmul.msk.bf16.gmra.mxu1 %vm375_vm2, %v701_v44  ;;  %1322 = vmatmul.msk.bf16.gmra.mxu3 %vm375_vm2, %v365_v31 }
  0x6f   : > { %1366 = vmatmul.msk.bf16.gmra.mxu2 %vm375_vm2, %v703_v50 }
  0x7c   : > { %1293 = vmatmul.msk.bf16.gmra.mxu0 %vm375_vm2, %v703_v50 }
  0x7e   : > { %1313 = vmatmul.msk.bf16.gmra.mxu1 %vm375_vm2, %v702_v47  ;;  %1374 = vmatmul.msk.bf16.vlgmr.msra.gmra.mxu3 %vm375_vm2, %v365_v31 }
  0x7f   : > { %1367 = vmatmul.msk.bf16.gmra.mxu2 %vm375_vm2, %v704_v53 }
  0x8c   : > { %1294 = vmatmul.msk.bf16.gmra.mxu0 %vm375_vm2, %v704_v53 }
  0x8e   : > { %1314 = vmatmul.msk.bf16.gmra.mxu1 %vm375_vm2, %v703_v50  ;;  %1375 = vmatmul.msk.bf16.gmra.mxu3 %vm375_vm2, %v366_v37 }
  0x8f   : > { %1368 = vmatmul.msk.bf16.gmra.mxu2 %vm375_vm2, %v705_v56 }
  0x99   : > { %v440_v61 = vpop.f32.mrf.mxu0 }
  0x9b   : > { %v585_v63 = vpop.f32.mrf.mxu1 }
  0x9c   : > { %v586_v1 = vadd.f32 %v585_v63, %v440_v61  ;;  %1295 = vmatmul.msk.bf16.gmra.mxu0 %vm375_vm2, %v705_v56 }
  0x9e   : > { %1315 = vmatmul.msk.bf16.gmra.mxu1 %vm375_vm2, %v704_v53  ;;  %1376 = vmatmul.msk.bf16.gmra.mxu3 %vm375_vm2, %v713_v62 }
  0x9f   : > { %1369 = vmatmul.msk.bf16.gmra.mxu2 %vm375_vm2, %v706_v0 }
  0xa1   : > { %v1764_v2 = vpop.f32.mrf.mxu3  ;;  %v442_v4 = vpop.f32.mrf.mxu0 }
  0xa2   : > { %v782_v3 = vpop.f32.mrf.mxu2 }
  0xa3   : > { %v862_v5 = vadd.f32 %v782_v3, %v586_v1  ;;  %v587_v6 = vpop.f32.mrf.mxu1 }
  0xa4   : > { %v588_v7 = vadd.f32 %v587_v6, %v442_v4 }
  0xa5   : > { %v898_v14 = vadd.f32 %v1769_v8, %v862_v5 }
  0xa7   : > { %v930_v20 = vmax.f32 %v898_v14, 0.0 }
  0xa9   : > { %v1773_v11 = vpop.f32.mrf.mxu3  ;;  %v445_v13 = vpop.f32.mrf.mxu0 }
  0xaa   : > { %v784_v12 = vpop.f32.mrf.mxu2 }
  0xab   : > { %v863_v15 = vadd.f32 %v784_v12, %v588_v7  ;;  %v590_v16 = vpop.f32.mrf.mxu1 }
  0xac   : > { %v591_v18 = vadd.f32 %v590_v16, %v445_v13  ;;  %1296 = vmatmul.msk.bf16.gmra.mxu0 %vm375_vm2, %v706_v0 }
  0xad   : > { %v899_v19 = vadd.f32 %v1769_v8, %v863_v15 }
  0xae   : > { %1316 = vmatmul.msk.bf16.gmra.mxu1 %vm375_vm2, %v705_v56 }
  0xaf   : > { %v931_v21 = vmax.f32 %v899_v19, 0.0  ;;  %1370 = vmatmul.msk.bf16.gmra.mxu2 %vm375_vm2, %v707_v17 }
  0xb1   : > { %v962_v23 = vadd.f32 %v931_v21, %v930_v20  ;;  %v1780_v24 = vpop.f32.mrf.mxu3  ;;  %v447_v26 = vpop.f32.mrf.mxu0 }
  0xb2   : > { %v787_v25 = vpop.f32.mrf.mxu2 }
  0xb3   : > { %v864_v27 = vadd.f32 %v787_v25, %v591_v18  ;;  %v592_v28 = vpop.f32.mrf.mxu1 }
  0xb4   : > { %v593_v29 = vadd.f32 %v592_v28, %v447_v26 }
  0xb5   : > { %v900_v30 = vadd.f32 %v1769_v8, %v864_v27 }
  0xb7   : > { %v932_v31 = vmax.f32 %v900_v30, 0.0 }
  0xb9   : > { %v963_v34 = vadd.f32 %v962_v23, %v932_v31  ;;  %v1785_v35 = vpop.f32.mrf.mxu3  ;;  %v450_v37 = vpop.f32.mrf.mxu0 }
  0xba   : > { %v789_v36 = vpop.f32.mrf.mxu2 }
  0xbb   : > { %v865_v38 = vadd.f32 %v789_v36, %v593_v29  ;;  %v595_v39 = vpop.f32.mrf.mxu1 }
  0xbc   : > { %v596_v41 = vadd.f32 %v595_v39, %v450_v37  ;;  %1297 = vmatmul.msk.bf16.gmra.mxu0 %vm375_vm2, %v707_v17 }
  0xbd   : > { %v901_v42 = vadd.f32 %v1769_v8, %v865_v38 }
  0xbe   : > { %1317 = vmatmul.msk.bf16.gmra.mxu1 %vm375_vm2, %v706_v0 }
  0xbf   : > { %v933_v44 = vmax.f32 %v901_v42, 0.0  ;;  %1371 = vmatmul.msk.bf16.gmra.mxu2 %vm375_vm2, %v708_v40 }
  0xc1   : > { %v964_v45 = vadd.f32 %v963_v34, %v933_v44  ;;  %v1791_v46 = vpop.f32.mrf.mxu3  ;;  %v452_v48 = vpop.f32.mrf.mxu0 }
  0xc2   : > { %v792_v47 = vpop.f32.mrf.mxu2 }
  0xc3   : > { %v866_v49 = vadd.f32 %v792_v47, %v596_v41  ;;  %v597_v50 = vpop.f32.mrf.mxu1 }
  0xc4   : > { %v598_v51 = vadd.f32 %v597_v50, %v452_v48 }
  0xc5   : > { %v902_v52 = vadd.f32 %v1769_v8, %v866_v49 }
  0xc7   : > { %v934_v53 = vmax.f32 %v902_v52, 0.0 }
  0xc9   : > { %v965_v54 = vadd.f32 %v964_v45, %v934_v53  ;;  %v1794_v55 = vpop.f32.mrf.mxu3  ;;  %v455_v57 = vpop.f32.mrf.mxu0 }
  0xca   : > { %v794_v56 = vpop.f32.mrf.mxu2 }
  0xcb   : > { %v867_v58 = vadd.f32 %v794_v56, %v598_v51  ;;  %v600_v59 = vpop.f32.mrf.mxu1 }
  0xcc   : > { %v601_v60 = vadd.f32 %v600_v59, %v455_v57  ;;  %1298 = vmatmul.msk.bf16.gmra.mxu0 %vm375_vm2, %v708_v40 }
  0xcd   : > { %v903_v61 = vadd.f32 %v1769_v8, %v867_v58 }
  0xce   : > { %1318 = vmatmul.msk.bf16.gmra.mxu1 %vm375_vm2, %v707_v17 }
  0xcf   : > { %v935_v62 = vmax.f32 %v903_v61, 0.0  ;;  %1372 = vmatmul.msk.bf16.gmra.mxu2 %vm375_vm2, %v1724_v43 }
  0xd1   : > { %v966_v63 = vadd.f32 %v965_v54, %v935_v62  ;;  %v650_v0 = vpop.f32.mrf.mxu3  ;;  %v457_v4 = vpop.f32.mrf.mxu0 }
  0xd2   : > { %v1802_v1 = vadd.f32 %v650_v0, %v1764_v2  ;;  %v797_v3 = vpop.f32.mrf.mxu2 }
  0xd3   : > { %v868_v5 = vadd.f32 %v797_v3, %v601_v60  ;;  %v602_v6 = vpop.f32.mrf.mxu1 }
  0xd4   : > { %v603_v7 = vadd.f32 %v602_v6, %v457_v4 }
  0xd5   : > { %v904_v9 = vadd.f32 %v1769_v8, %v868_v5 }
  0xd7   : > { %v936_v10 = vmax.f32 %v904_v9, 0.0 }
  0xd9   : > { %v967_v12 = vadd.f32 %v966_v63, %v936_v10  ;;  %v652_v13 = vpop.f32.mrf.mxu3  ;;  %v460_v16 = vpop.f32.mrf.mxu0 }
  0xda   : > { %v1806_v14 = vadd.f32 %v652_v13, %v1773_v11  ;;  %v799_v15 = vpop.f32.mrf.mxu2 }
  0xdb   : > { %v869_v17 = vadd.f32 %v799_v15, %v603_v7  ;;  %v605_v18 = vpop.f32.mrf.mxu1 }
  0xdc   : > { %v606_v19 = vadd.f32 %v605_v18, %v460_v16  ;;  %1299 = vmatmul.msk.bf16.gmra.mxu0 %vm375_vm2, %v1724_v43 }
  0xdd   : > { %v905_v2 = vadd.f32 %v1769_v8, %v869_v17 }
  0xde   : > { %1319 = vmatmul.msk.bf16.gmra.mxu1 %vm375_vm2, %v708_v40 }
  0xdf   : > { %v937_v20 = vmax.f32 %v905_v2, 0.0  ;;  %1373 = vmatmul.msk.bf16.gmra.mxu2 %vm375_vm2, %v1695_v22 }
  0xe1   : > { %v968_v21 = vadd.f32 %v967_v12, %v937_v20  ;;  %v655_v23 = vpop.f32.mrf.mxu3  ;;  %v462_v26 = vpop.f32.mrf.mxu0 }
  0xe2   : > { %v1815_v11 = vadd.f32 %v655_v23, %v1780_v24  ;;  %v802_v25 = vpop.f32.mrf.mxu2 }
  0xe3   : > { %v870_v27 = vadd.f32 %v802_v25, %v606_v19  ;;  %v607_v28 = vpop.f32.mrf.mxu1 }
  0xe4   : > { %v608_v29 = vadd.f32 %v607_v28, %v462_v26 }
  0xe5   : > { %v906_v30 = vadd.f32 %v1769_v8, %v870_v27 }
  0xe7   : > { %v938_v31 = vmax.f32 %v906_v30, 0.0 }
  0xe9   : > { %v969_v43 = vadd.f32 %v968_v21, %v938_v31  ;;  %v465_v33 = vpop.f32.mrf.mxu0  ;;  %v1826_v26 = vpop.f32.mrf.mxu3 }
  0xea   : > { %v804_v32 = vpop.f32.mrf.mxu2 }
  0xeb   : > { %v871_v34 = vadd.f32 %v804_v32, %v608_v29  ;;  %v610_v36 = vpop.f32.mrf.mxu1 }
  0xec   : > { %v611_v37 = vadd.f32 %v610_v36, %v465_v33 }
  0xed   : > { %v907_v22 = vadd.f32 %v1769_v8, %v871_v34 }
  0xef   : > { %v939_v38 = vmax.f32 %v907_v22, 0.0 }
  0xf1   : > { %v970_v39 = vadd.f32 %v969_v43, %v939_v38  ;;  %v467_v40 = vpop.f32.mrf.mxu0  ;;  %v1828_v30 = vpop.f32.mrf.mxu3 }
  0xf2   : > { %v807_v24 = vpop.f32.mrf.mxu2 }
  0xf3   : > { %v872_v41 = vadd.f32 %v807_v24, %v611_v37  ;;  %v612_v42 = vpop.f32.mrf.mxu1 }
  0xf4   : > { %v613_v44 = vadd.f32 %v612_v42, %v467_v40  ;;  %v1435_v40 = vld [vmem:[%s2009_s3 + $0x70] sm:$0xf] }
  0xf5   : > { %v908_v45 = vadd.f32 %v1769_v8, %v872_v41  ;;  %v1463_v41 = vld [vmem:[%s2009_s3 + $0x74] sm:$0xf0] }
  0xf6   : > { %v1436_v42 = vor.u32 %v1463_v41, %v1435_v40 }
  0xf7   : > { %v940_v47 = vmax.f32 %v908_v45, 0.0 }
  0xf8   : > { %1110 = vmatpush.bf16.msrb.mxu3 %v1436_v42 }
  0xf9   : > { %v971_v48 = vadd.f32 %v970_v39, %v940_v47  ;;  %v470_v50 = vpop.f32.mrf.mxu0  ;;  %v1830_v36 = vpop.f32.mrf.mxu3 }
  0xfa   : > { %v809_v49 = vpop.f32.mrf.mxu2 }
  0xfb   : > { %v873_v51 = vadd.f32 %v809_v49, %v613_v44  ;;  %v615_v52 = vpop.f32.mrf.mxu1  ;;  %v1461_v49 = vld [vmem:[%s2009_s3 + $0x64] sm:$0xf0] }
  0xfc   : > { %v616_v53 = vadd.f32 %v615_v52, %v470_v50  ;;  %v1419_v52 = vld [vmem:[%s2009_s3 + $0x50] sm:$0xf] }
  0xfd   : > { %v909_v54 = vadd.f32 %v1769_v8, %v873_v51 }
  0xff   : > { %v941_v56 = vmax.f32 %v909_v54, 0.0 }
 0x101   : > { %v972_v57 = vadd.f32 %v971_v48, %v941_v56  ;;  %v472_v59 = vpop.f32.mrf.mxu0  ;;  %v1832_v24 = vpop.f32.mrf.mxu3  ;;  %v1427_v48 = vld [vmem:[%s2009_s3 + $0x60] sm:$0xf] }
 0x102   : > { %v812_v58 = vpop.f32.mrf.mxu2  ;;  %v1428_v50 = vor.u32 %v1461_v49, %v1427_v48  ;;  %v1379_v48 = vld [vmem:[%s2009_s3] sm:$0xf]  ;;  %v1449_v49 = vld [vmem:[%s2009_s3 + $0x4] sm:$0xf0] }
 0x103   : > { %v874_v60 = vadd.f32 %v812_v58, %v616_v53  ;;  %v617_v61 = vpop.f32.mrf.mxu1  ;;  %v1459_v53 = vld [vmem:[%s2009_s3 + $0x54] sm:$0xf0] }
 0x104   : > { %v618_v62 = vadd.f32 %v617_v61, %v472_v59  ;;  %1111 = vmatpush.bf16.msrb.mxu3 %v1428_v50  ;;  %v1420_v54 = vor.u32 %v1459_v53, %v1419_v52  ;;  %v1411_v59 = vld [vmem:[%s2009_s3 + $0x40] sm:$0xf] }
 0x105   : > { %v910_v63 = vadd.f32 %v1769_v8, %v874_v60  ;;  %v1457_v60 = vld [vmem:[%s2009_s3 + $0x44] sm:$0xf0] }
 0x106   : > { %v1412_v61 = vor.u32 %v1457_v60, %v1411_v59  ;;  %v1460_v59 = vld [vmem:[%s2009_s3 + $0x64] sm:$0xf] }
 0x107   : > { %v942_v0 = vmax.f32 %v910_v63, 0.0 }
 0x108   : > { %1112 = vmatpush.bf16.msrb.mxu3 %v1420_v54 }
 0x109   : > { %v973_v3 = vadd.f32 %v972_v57, %v942_v0  ;;  %v475_v5 = vpop.f32.mrf.mxu0  ;;  %v1846_v51 = vpop.f32.mrf.mxu3 }
 0x10a   : > { %v814_v4 = vpop.f32.mrf.mxu2 }
 0x10b   : > { %v875_v6 = vadd.f32 %v814_v4, %v618_v62  ;;  %v620_v7 = vpop.f32.mrf.mxu1  ;;  %v1455_v4 = vld [vmem:[%s2009_s3 + $0x34] sm:$0xf0] }
 0x10c   : > { %v621_v9 = vadd.f32 %v620_v7, %v475_v5  ;;  %1113 = vmatpush.bf16.msrb.mxu3 %v1412_v61 }
 0x10d   : > { %v911_v10 = vadd.f32 %v1769_v8, %v875_v6 }
 0x10f   : > { %v943_v12 = vmax.f32 %v911_v10, 0.0 }
 0x111   : > { %v974_v13 = vadd.f32 %v973_v3, %v943_v12  ;;  %v477_v16 = vpop.f32.mrf.mxu0  ;;  %v1403_v3 = vld [vmem:[%s2009_s3 + $0x30] sm:$0xf]  ;;  %v1866_v5 = vpop.f32.mrf.mxu3 }
 0x112   : > { %v817_v15 = vpop.f32.mrf.mxu2  ;;  %v1404_v6 = vor.u32 %v1455_v4, %v1403_v3 }
 0x113   : > { %v876_v17 = vadd.f32 %v817_v15, %v621_v9  ;;  %v622_v18 = vpop.f32.mrf.mxu1 }
 0x114   : > { %v623_v62 = vadd.f32 %v622_v18, %v477_v16  ;;  %1114 = vmatpush.bf16.msrb.mxu3 %v1404_v6  ;;  %v1453_v18 = vld [vmem:[%s2009_s3 + $0x24] sm:$0xf0] }
 0x115   : > { %v912_v19 = vadd.f32 %v1769_v8, %v876_v17  ;;  %v1395_v17 = vld [vmem:[%s2009_s3 + $0x20] sm:$0xf] }
 0x117   : > { %v944_v2 = vmax.f32 %v912_v19, 0.0 }
 0x119   : > { %v1824_v20 = vadd.f32 %v974_v13, %v944_v2  ;;  %v480_v23 = vpop.f32.mrf.mxu0  ;;  %v1396_v2 = vor.u32 %v1453_v18, %v1395_v17 }
 0x11a   : > { %v819_v21 = vpop.f32.mrf.mxu2 }
 0x11b   : > { %v625_v25 = vpop.f32.mrf.mxu1  ;;  %v877_v0 = vadd.f32 %v819_v21, %v623_v62  ;;  %1115 = vmatpush.bf16.msrb.mxu3 %v1396_v2 }
 0x11c   : > { %v626_v63 = vadd.f32 %v625_v25, %v480_v23 }
 0x11d   : > { %v913_v16 = vadd.f32 %v1769_v8, %v877_v0 }
 0x121   : > { %v482_v28 = vpop.f32.mrf.mxu0 }
 0x122   : > { %v822_v27 = vpop.f32.mrf.mxu2 }
 0x123   : > { %v627_v29 = vpop.f32.mrf.mxu1  ;;  %v878_v7 = vadd.f32 %v822_v27, %v626_v63 }
 0x124   : > { %v628_v13 = vadd.f32 %v627_v29, %v482_v28  ;;  %v945_v28 = vmax.f32 %v913_v16, 0.0  ;;  %v1387_v29 = vld [vmem:[%s2009_s3 + $0x10] sm:$0xf]  ;;  %v1421_v16 = vld [vmem:[%s2009_s3 + $0x58] sm:$0xf0] }
 0x125   : > { %v914_v21 = vadd.f32 %v1769_v8, %v878_v7 }
 0x126   : > { %v976_v50 = vadd.f32 %v1824_v20, %v945_v28  ;;  %v1429_v20 = vld [vmem:[%s2009_s3 + $0x68] sm:$0xf0] }
 0x127   : > { %v946_v41 = vmax.f32 %v914_v21, 0.0  ;;  %v1432_v4 = vor.u32 %v1460_v59, %v1429_v20  ;;  %v1413_v28 = vld [vmem:[%s2009_s3 + $0x48] sm:$0xf0] }
 0x129   : > { %v485_v43 = vpop.f32.mrf.mxu0  ;;  %v977_v60 = vadd.f32 %v976_v50, %v946_v41 }
 0x12a   : > { %v824_v31 = vpop.f32.mrf.mxu2 }
 0x12b   : > { %v630_v32 = vpop.f32.mrf.mxu1  ;;  %v879_v19 = vadd.f32 %v824_v31, %v628_v13  ;;  %v1458_v13 = vld [vmem:[%s2009_s3 + $0x54] sm:$0xf] }
 0x12c   : > { %v631_v9 = vadd.f32 %v630_v32, %v485_v43  ;;  %v1451_v43 = vld [vmem:[%s2009_s3 + $0x14] sm:$0xf0] }
 0x12d   : > { %v915_v32 = vadd.f32 %v1769_v8, %v879_v19  ;;  %v1388_v31 = vor.u32 %v1451_v43, %v1387_v29  ;;  %v1424_v19 = vor.u32 %v1458_v13, %v1421_v16  ;;  %v1448_v13 = vld [vmem:[%s2009_s3 + $0x4] sm:$0xf]  ;;  %v1381_v16 = vld [vmem:[%s2009_s3 + $0x8] sm:$0xf0] }
 0x12f   : > { %1116 = vmatpush.bf16.msrb.mxu3 %v1388_v31 }
 0x131   : > { %v487_v34 = vpop.f32.mrf.mxu0 }
 0x132   : > { %v827_v33 = vpop.f32.mrf.mxu2 }
 0x133   : > { %v632_v37 = vpop.f32.mrf.mxu1  ;;  %v880_v23 = vadd.f32 %v827_v33, %v631_v9 }
 0x134   : > { %v633_v25 = vadd.f32 %v632_v37, %v487_v34  ;;  %v1884_v34 = vpop.f32.mrf.mxu3 }
 0x135   : > { %v916_v42 = vadd.f32 %v1769_v8, %v880_v23 }
 0x137   : > { %v948_v61 = vmax.f32 %v916_v42, 0.0  ;;  %v888_v42 = vadd.f32 %v1832_v24, %v1802_v1 }
 0x139   : > { %v490_v38 = vpop.f32.mrf.mxu0 }
 0x13a   : > { %v829_v22 = vpop.f32.mrf.mxu2 }
 0x13b   : > { %v635_v39 = vpop.f32.mrf.mxu1  ;;  %v881_v40 = vadd.f32 %v829_v22, %v633_v25  ;;  %v1462_v22 = vld [vmem:[%s2009_s3 + $0x74] sm:$0xf] }
 0x13c   : > { %v636_v27 = vadd.f32 %v635_v39, %v490_v38  ;;  %v857_v2 = vpop.f32.mrf.mxu3 }
 0x13d   : > { %v917_v54 = vadd.f32 %v1769_v8, %v881_v40 }
 0x13f   : > { %v949_v6 = vmax.f32 %v917_v54, 0.0  ;;  %v1577_v54 = vmov 256.0  }
 0x140   : > { %1510 = vrcp.f32 %v1577_v54 }
 0x141   : > { %v492_v45 = vpop.f32.mrf.mxu0 }
 0x142   : > { %v832_v44 = vpop.f32.mrf.mxu2 }
 0x143   : > { %v637_v47 = vpop.f32.mrf.mxu1  ;;  %v882_v37 = vadd.f32 %v832_v44, %v636_v27  ;;  %v1380_v44 = vor.u32 %v1449_v49, %v1379_v48  ;;  %v1456_v27 = vld [vmem:[%s2009_s3 + $0x44] sm:$0xf] }
 0x144   : > { %v638_v38 = vadd.f32 %v637_v47, %v492_v45  ;;  %v1437_v45 = vld [vmem:[%s2009_s3 + $0x78] sm:$0xf0]  ;;  %v947_v47 = vmax.f32 %v915_v32, 0.0  ;;  %v1416_v41 = vor.u32 %v1456_v27, %v1413_v28 }
 0x145   : > { %v918_v62 = vadd.f32 %v1769_v8, %v882_v37  ;;  %1117 = vmatpush.bf16.msrb.mxu3 %v1380_v44  ;;  %v890_v44 = vadd.f32 %v1866_v5, %v1815_v11 }
 0x149   : > { %v495_v57 = vpop.f32.mrf.mxu0 }
 0x14a   : > { %v834_v56 = vpop.f32.mrf.mxu2 }
 0x14b   : > { %v640_v58 = vpop.f32.mrf.mxu1 }
 0x14c   : > { %v641_v39 = vadd.f32 %v640_v58, %v495_v57  ;;  %v883_v57 = vadd.f32 %v834_v56, %v638_v38  ;;  %v1440_v58 = vor.u32 %v1462_v22, %v1437_v45  ;;  %v978_v56 = vadd.f32 %v977_v60, %v947_v47 }
 0x14e   : > { %1123 = vmatpush.bf16.msra.mxu3 %v1440_v58  ;;  %v919_v7 = vadd.f32 %v1769_v8, %v883_v57  ;;  %v1452_v57 = vld [vmem:[%s2009_s3 + $0x24] sm:$0xf]  ;;  %v1397_v58 = vld [vmem:[%s2009_s3 + $0x28] sm:$0xf0] }
 0x14f   : > { %v1400_v59 = vor.u32 %v1452_v57, %v1397_v58 }
 0x150   : > { %v951_v23 = vmax.f32 %v919_v7, 0.0 }
 0x151   : > { %v497_v12 = vpop.f32.mrf.mxu0 }
 0x152   : > { %v837_v10 = vpop.f32.mrf.mxu2  ;;  %1124 = vmatpush.bf16.msra.mxu3 %v1432_v4 }
 0x153   : > { %v642_v15 = vpop.f32.mrf.mxu1  ;;  %v884_v63 = vadd.f32 %v837_v10, %v641_v39  ;;  %v979_v10 = vadd.f32 %v978_v56, %v948_v61  ;;  %v889_v39 = vadd.f32 %v1846_v51, %v1806_v14  ;;  %v1454_v14 = vld [vmem:[%s2009_s3 + $0x34] sm:$0xf]  ;;  %v1405_v51 = vld [vmem:[%s2009_s3 + $0x38] sm:$0xf0]  ;;  %v1511_v56 = vpop.eup %1510 }
 0x154   : > { %v643_v0 = vadd.f32 %v642_v15, %v497_v12  ;;  %v950_v12 = vmax.f32 %v918_v62, 0.0  ;;  %v1408_v45 = vor.u32 %v1454_v14, %v1405_v51  ;;  %v1450_v62 = vld [vmem:[%s2009_s3 + $0x14] sm:$0xf]  ;;  %vm1004_vm3 = vweird.f32 %v1511_v56 }
 0x155   : > { %v920_v15 = vadd.f32 %v1769_v8, %v884_v63  ;;  %v980_v21 = vadd.f32 %v979_v10, %v949_v6  ;;  %v1389_v63 = vld [vmem:[%s2009_s3 + $0x18] sm:$0xf0]  ;;  %v1150_v14 = vlaneseq }
 0x156   : > { %1125 = vmatpush.bf16.msra.mxu3 %v1424_v19  ;;  %v1392_v4 = vor.u32 %v1450_v62, %v1389_v63 }
 0x157   : > { %v981_v32 = vadd.f32 %v980_v21, %v950_v12  ;;  %v952_v40 = vmax.f32 %v920_v15, 0.0  ;;  %v1000_v15 = vmul.f32 256.0, %v1511_v56  ;;  %vm1152_vm5 = vcmp.lt.s32.totalorder %v1150_v14, 256 }
 0x159   : > { %v500_v52 = vpop.f32.mrf.mxu0 }
 0x15a   : > { %v839_v33 = vpop.f32.mrf.mxu2  ;;  %1126 = vmatpush.bf16.msra.mxu3 %v1416_v41 }
 0x15b   : > { %v645_v53 = vpop.f32.mrf.mxu1  ;;  %v885_v9 = vadd.f32 %v839_v33, %v643_v0  ;;  %v982_v33 = vadd.f32 %v981_v32, %v951_v23 }
 0x15c   : > { %v646_v3 = vadd.f32 %v645_v53, %v500_v52  ;;  %v658_v52 = vadd.f32 %v1826_v26, %v1785_v35  ;;  %v924_v53 = vadd.f32 %v1769_v8, %v888_v42  ;;  %v661_v35 = vadd.f32 %v1828_v30, %v1791_v46  ;;  %v859_v30 = vpop.f32.mrf.mxu3 }
 0x15d   : > { %v921_v25 = vadd.f32 %v1769_v8, %v885_v9  ;;  %v983_v49 = vadd.f32 %v982_v33, %v952_v40  ;;  %v925_v26 = vadd.f32 %v1769_v8, %v889_v39  ;;  %v663_v46 = vadd.f32 %v1830_v36, %v1794_v55 }
 0x15e   : > { %v891_v47 = vadd.f32 %v1884_v34, %v658_v52  ;;  %1127 = vmatpush.bf16.msra.mxu3 %v1408_v45  ;;  %v956_v20 = vmax.f32 %v924_v53, 0.0  ;;  %v926_v34 = vadd.f32 %v1769_v8, %v890_v44  ;;  %v892_v60 = vadd.f32 %v857_v2, %v661_v35 }
 0x15f   : > { %v953_v37 = vmax.f32 %v921_v25, 0.0  ;;  %v957_v0 = vmax.f32 %v925_v26, 0.0  ;;  %v893_v55 = vadd.f32 %v859_v30, %v663_v46  ;;  %v1001_v25 = vsub.f32 1.0, %v1000_v15 }
 0x160   : > { %v958_v6 = vmax.f32 %v926_v34, 0.0  ;;  %v928_v7 = vadd.f32 %v1769_v8, %v892_v60 }
 0x161   : > { %v502_v29 = vpop.f32.mrf.mxu0  ;;  %v984_v1 = vadd.f32 %v983_v49, %v953_v37  ;;  %v929_v10 = vadd.f32 %v1769_v8, %v893_v55 }
 0x162   : > { %v842_v17 = vpop.f32.mrf.mxu2  ;;  %1128 = vmatpush.bf16.msra.mxu3 %v1400_v59  ;;  %v960_v19 = vmax.f32 %v928_v7, 0.0 }
 0x163   : > { %v886_v18 = vadd.f32 %v842_v17, %v646_v3  ;;  %v647_v43 = vpop.f32.mrf.mxu1  ;;  %v927_v3 = vadd.f32 %v1769_v8, %v891_v47  ;;  %v961_v21 = vmax.f32 %v929_v10, 0.0 }
 0x164   : > { %v648_v38 = vadd.f32 %v647_v43, %v502_v29  ;;  %v1002_v29 = vmul.f32 %v1511_v56, %v1001_v25 }
 0x165   : > { %v922_v31 = vadd.f32 %v1769_v8, %v886_v18  ;;  %v959_v17 = vmax.f32 %v927_v3, 0.0  ;;  %v1384_v18 = vor.u32 %v1448_v13, %v1381_v16 }
 0x166   : > { %1129 = vmatpush.bf16.msra.mxu3 %v1392_v4  ;;  %v1003_v40 = vadd.f32 %v1511_v56, %v1002_v29 }
 0x167   : > { %v954_v22 = vmax.f32 %v922_v31, 0.0 }
 0x168   : > { %v1005_v41 = vsel %vm1004_vm3, %v1511_v56, %v1003_v40 }
 0x169   : > { %v985_v11 = vadd.f32 %v984_v1, %v954_v22 }
 0x16a   : > { %v844_v48 = vpop.f32.mrf.mxu2  ;;  %1130 = vmatpush.bf16.msra.mxu3 %v1384_v18 }
 0x16b   : > { %v887_v50 = vadd.f32 %v844_v48, %v648_v38  ;;  %v1024_v48 = vld [vmem:[%s2010_s4] sm:$0x3] }
 0x16c   : > { %v1106_v49 = vperm.slane %v1024_v48, 0  ;;  %v1107_v22 = vperm.slane %v1024_v48, 1 }
 0x16d   : > { %v923_v24 = vadd.f32 %v1769_v8, %v887_v50  ;;  %v1136_v50 = vld [vmem:[%s266_s13] sm:$0x3] }
 0x16e   : > { %v1139_v52 = vperm.slane %v1136_v50, 1  ;;  %v1138_v1 = vperm.slane %v1136_v50, 0 }
 0x16f   : > { %v955_v5 = vmax.f32 %v923_v24, 0.0 }
 0x171   : > { %v986_v61 = vadd.f32 %v985_v11, %v955_v5 }
 0x173   : > { %v987_v36 = vadd.f32 %v986_v61, %v956_v20 }
 0x175   : > { %v988_v9 = vadd.f32 %v987_v36, %v957_v0 }
 0x177   : > { %v989_v12 = vadd.f32 %v988_v9, %v958_v6 }
 0x179   : > { %v990_v2 = vadd.f32 %v989_v12, %v959_v17 }
 0x17b   : > { %v991_v23 = vadd.f32 %v990_v2, %v960_v19 }
 0x17d   : > { %v992_v27 = vadd.f32 %v991_v23, %v961_v21 }
 0x17f   : > { %v993_v28 = vrot.slane %v992_v27, 4 }
 0x181   : > { %v994_v43 = vadd.f32 %v993_v28, %v992_v27 }
 0x183   : > { %v995_v32 = vrot.slane %v994_v43, 2 }
 0x185   : > { %v996_v31 = vadd.f32 %v995_v32, %v994_v43 }
 0x187   : > { %v997_v8 = vrot.slane %v996_v31, 1 }
 0x189   : > { %v998_v42 = vadd.f32 %v997_v8, %v996_v31 }
 0x18b   : > { %v1006_v33 = vmul.f32 %v1005_v41, %v998_v42 }
 0x18d   : > { %v1007_v37 = vpack.c.bf16 %v1006_v33, %v1006_v33 }
 0x18f   : > { %1118 = vmatmul.bf16.vlgmr.msrb.gmra.mxu3 %v1007_v37 }
 0x19f   : > { %1131 = vmatmul.bf16.vlgmr.msra.gmra.mxu3 %v1007_v37 }
 0x212   : > { %v1119_v38 = vpop.f32.mrf.mxu3 }
 0x213   : > { %v1120_v44 = vadd.f32 %v1119_v38, %v1106_v49 }
 0x215   : > { %v1142_v35 = vmul.f32 %v1138_v1, %v1120_v44 }
 0x21a   : > { %v1121_v39 = vpop.f32.mrf.mxu3 }
 0x222   : > { %v1132_v53 = vpop.f32.mrf.mxu3 }
 0x223   : > { %v1133_v24 = vadd.f32 %v1132_v53, %v1107_v22 }
 0x225   : > { %v1143_v51 = vmul.f32 %v1139_v52, %v1133_v24 }
 0x227   : > { %v1146_v26 = vrot.slane %v1143_v51, 7 }
 0x229   : > { %v1148_v45 = vsel %vm1147_vm4, %v1142_v35, %v1146_v26 }
 0x22a   : > { %v1134_v47 = vpop.f32.mrf.mxu3  ;;  %1154 = vst.msk [vmem:[%s257_s18] sm:$0x3] %vm1152_vm5, %v1148_v45 }
 0x22b   : > { %1539 = shalt.err (!%p1536_p3)
}
 0x22c   : > { %1468 = dma.vmem_to_hbm [thread:$0]  (%p1651_p5), %s1169_s19, 32, %s1171_s20, %s1156_s25  }
 0x22d PF: > { %p1474_p4 = scmp.ge.s32.totalorder %s1574_s24, 2  ;;  %s1182_s10 = sand.u32 1, %s1562_s21  }
 0x22e   : > { %s1183_s15 = scalar_lea.sflag [#allocation3], %s1182_s10 }
 0x22f   : > { %p1471_p7 = pnand %p1474_p4, %p1655_p6 }
 0x231   : > { %p1472_p8 = pneg %p1471_p7 }
 0x233   : > { %1557 = dma.done.wait (%p1472_p8), %s1183_s15, 32  }
 0x234   : > { %1559 = vsyncadd (%p1472_p8), %s1183_s15, 4294967264  ;;  %p16_p9 = scmp.ge.s32.totalorder %s1638_s27, 4   ;;  %s2015_s21 = smov %s1566_s22 }
 0x235   : > { %s2016_s22 = smov %s1570_s23  ;;  %s2017_s23 = smov %s1649_s30 }
 0x236   : > { %s2018_s24 = smov %s1638_s27  ;;  %18 = sbr.rel (!%p16_p9) target bundleno = 3 (0x3), region = 86 }
 0x23b   :  { %1189 = vsyncpa [#allocation3], 1 }
 0x23c   :  { %1191 = vsyncpa [#allocation3 + $0x1], 1 }

</bundles_post_ra>
